<compile_context>
chip_gen: v7x
topology: tpu7x:2x2x1
jax: 0.10.0
libtpu: 0.0.40
codegen_flags: <defaults>
</compile_context>

<pallas_src>
import jax
import jax.numpy as jnp
from jax import lax
from jax.experimental import pallas as pl
from jax.experimental.pallas import tpu as pltpu

LANE = 128
ALIGN = 16  # bf16 sublane packing: keep batch blocks (16, 128)-aligned


def _round_up(x, m):
    return (x + m - 1) // m * m


def mlp_kernel(x_ref,
               w1_ref, b1_ref,
               w2_ref, b2_ref,
               w3_ref, b3_ref,
               w4_ref, b4_ref,
               w5_ref, b5_ref,
               o_ref):
    # fc1: (TILE_B, 3072) bf16 @ (3072, 8) bf16 -> f32 acc, + b1, ReLU
    h = jnp.dot(x_ref[...], w1_ref[...], preferred_element_type=jnp.float32)
    h = jnp.maximum(h + b1_ref[...], 0.0)
    # fc2: (TILE_B, 8) @ (8, 16) + b2, ReLU
    h = jnp.dot(h, w2_ref[...], preferred_element_type=jnp.float32)
    h = jnp.maximum(h + b2_ref[...], 0.0)
    # fc3: (TILE_B, 16) @ (16, 32) + b3, ReLU
    h = jnp.dot(h, w3_ref[...], preferred_element_type=jnp.float32)
    h = jnp.maximum(h + b3_ref[...], 0.0)
    # fc4: (TILE_B, 32) @ (32, 64) + b4, ReLU
    h = jnp.dot(h, w4_ref[...], preferred_element_type=jnp.float32)
    h = jnp.maximum(h + b4_ref[...], 0.0)
    # fc5: (TILE_B, 64) @ (64, n_pad) + b5   (no activation; n_pad = 128 lanes)
    h = jnp.dot(h, w5_ref[...], preferred_element_type=jnp.float32)
    o_ref[...] = h + b5_ref[...]


def my_neural_network_forward(x, params, *, max_tile_b=512):
    """x: [B, 3, 32, 32] float32 (NCHW). Returns [B, num_classes] float32."""
    B = x.shape[0]
    x_flat = x.reshape(B, -1)                      # nn.Flatten() (metadata only)
    in_dim = x_flat.shape[1]
    # bf16 for the dominant HBM operand (f32 accumulation inside the kernel).
    x_flat = x_flat.astype(jnp.bfloat16)

    (w1, b1), (w2, b2), (w3, b3), (w4, b4), (w5, b5) = params
    w1 = w1.astype(jnp.bfloat16)
    num_classes = w5.shape[1]

    # Lane-dense output: pad the class dim to 128 lanes; extra columns are zero
    # and sliced off by the wrapper.
    n_pad = _round_up(num_classes, LANE)
    w5p = jnp.zeros((w5.shape[0], n_pad), jnp.float32).at[:, :num_classes].set(w5)
    b5p = jnp.zeros((1, n_pad), jnp.float32).at[:, :num_classes].set(b5)

    # Pad batch only to the 16-row alignment (never to a multiple of tile_b).
    B_al = _round_up(B, ALIGN)
    if B_al != B:
        x_flat = jnp.pad(x_flat, ((0, B_al - B), (0, 0)))

    # >=4 grid steps when the batch allows it (pipelining + v7x 2-TC split),
    # tile capped at 512 rows; last block may be partial (pl.cdiv grid).
    tile_b = min(max_tile_b, _round_up(pl.cdiv(B_al, 4), ALIGN))
    grid = (pl.cdiv(B_al, tile_b),)

    def resident(arr):
        # Full-array block with a constant index_map: DMA'd once, stays in VMEM
        # across all batch tiles.
        return pl.BlockSpec(arr.shape, lambda i: (0,) * arr.ndim)

    weights = (w1, b1, w2, b2, w3, b3, w4, b4, w5p, b5p)
    in_specs = [pl.BlockSpec((tile_b, in_dim), lambda i: (i, 0))]
    in_specs += [resident(a) for a in weights]

    out = pl.pallas_call(
        mlp_kernel,
        out_shape=jax.ShapeDtypeStruct((B_al, n_pad), jnp.float32),
        grid=grid,
        in_specs=in_specs,
        out_specs=pl.BlockSpec((tile_b, n_pad), lambda i: (i, 0)),
        compiler_params=pltpu.CompilerParams(
            # Batch tiles are independent -> shard across TCs on v7x.
            dimension_semantics=("parallel",),
            # 2 x 3 MiB bf16 x-tiles + resident weights + output buffers, with
            # plenty of headroom; safe on v5e/v6e/v7x.
            vmem_limit_bytes=32 * 1024 * 1024,
        ),
    )(x_flat, *weights)

    return out[:B, :num_classes]


def init_params(key, num_classes=10):
    """Deterministic init mirroring the PyTorch layer shapes.

    PyTorch nn.Linear stores weight as (out, in); here we store the transposed
    (in, out) layout so the kernel computes x @ W + b directly.
    Biases are kept 2-D (1, out) so they broadcast cleanly on TPU.
    """
    dims = [(3072, 8), (8, 16), (16, 32), (32, 64), (64, num_classes)]
    params = []
    for (fan_in, fan_out) in dims:
        key, kw, kb = jax.random.split(key, 3)
        bound = 1.0 / jnp.sqrt(fan_in)
        w = jax.random.uniform(kw, (fan_in, fan_out), jnp.float32, -bound, bound)
        b = jax.random.uniform(kb, (1, fan_out), jnp.float32, -bound, bound)
        params.append((w, b))
    return params


def reference_forward(x, params, *, fc1_bf16=False):
    """Pure-JAX reference. fc1_bf16=True mirrors the kernel's bf16 fc1 inputs."""
    h = x.reshape(x.shape[0], -1).astype(jnp.float32)
    for i, (w, b) in enumerate(params):
        if i == 0 and fc1_bf16:
            h = jnp.dot(h.astype(jnp.bfloat16), w.astype(jnp.bfloat16),
                        preferred_element_type=jnp.float32) + b
        else:
            h = jnp.dot(h, w, precision=lax.Precision.HIGHEST,
                        preferred_element_type=jnp.float32) + b
        if i < len(params) - 1:
            h = jnp.maximum(h, 0.0)
    return h


if __name__ == "__main__":
    key = jax.random.PRNGKey(0)
    key, kx = jax.random.split(key)
    # Small batch; spatial/channel shapes implied by Linear(3072, ...) = 3*32*32
    x = jax.random.normal(kx, (2, 3, 32, 32), dtype=jnp.float32)

    params = init_params(key, num_classes=10)

    out = my_neural_network_forward(x, params)
    out = jax.block_until_ready(out)
    assert out.shape == (2, 10)

    # Tight check vs a reference that mirrors the kernel's bf16 fc1 path.
    ref_bf16 = reference_forward(x, params, fc1_bf16=True)
    assert jnp.allclose(out, ref_bf16, atol=1e-3, rtol=1e-3), \
        "mismatch vs bf16-matched reference"

    # Looser check vs the full-f32 reference (bf16 fc1 intentionally exceeds 1e-5).
    ref_f32 = reference_forward(x, params, fc1_bf16=False)
    assert jnp.allclose(out, ref_f32, atol=3e-2, rtol=3e-2), \
        "mismatch vs f32 reference"

    print("KERNEL_OK")
</pallas_src>

<mosaic_0001>
module attributes {stable_mosaic.version = 11 : i64} {
  func.func @mlp_kernel(%arg0: i32, %arg1: memref<16x3072xbf16, #tpu.memory_space<vmem>>, %arg2: memref<3072x8xbf16, #tpu.memory_space<vmem>>, %arg3: memref<1x8xf32, #tpu.memory_space<vmem>>, %arg4: memref<8x16xf32, #tpu.memory_space<vmem>>, %arg5: memref<1x16xf32, #tpu.memory_space<vmem>>, %arg6: memref<16x32xf32, #tpu.memory_space<vmem>>, %arg7: memref<1x32xf32, #tpu.memory_space<vmem>>, %arg8: memref<32x64xf32, #tpu.memory_space<vmem>>, %arg9: memref<1x64xf32, #tpu.memory_space<vmem>>, %arg10: memref<64x128xf32, #tpu.memory_space<vmem>>, %arg11: memref<1x128xf32, #tpu.memory_space<vmem>>, %arg12: memref<16x128xf32, #tpu.memory_space<vmem>>) attributes {dimension_semantics = [#tpu.dimension_semantics<parallel>], iteration_bounds = array<i64: 1>, scalar_prefetch = 0 : i64, scratch_operands = 0 : i64, tpu.core_type = #tpu.core_type<tc>, window_params = [{transform_indices = @transform_0, window_bounds = array<i64: 16, 3072>}, {pipeline_mode = #tpu.pipeline_mode<synchronous>, transform_indices = @transform_1, window_bounds = array<i64: 3072, 8>}, {pipeline_mode = #tpu.pipeline_mode<synchronous>, transform_indices = @transform_2, window_bounds = array<i64: 1, 8>}, {pipeline_mode = #tpu.pipeline_mode<synchronous>, transform_indices = @transform_3, window_bounds = array<i64: 8, 16>}, {pipeline_mode = #tpu.pipeline_mode<synchronous>, transform_indices = @transform_4, window_bounds = array<i64: 1, 16>}, {pipeline_mode = #tpu.pipeline_mode<synchronous>, transform_indices = @transform_5, window_bounds = array<i64: 16, 32>}, {pipeline_mode = #tpu.pipeline_mode<synchronous>, transform_indices = @transform_6, window_bounds = array<i64: 1, 32>}, {pipeline_mode = #tpu.pipeline_mode<synchronous>, transform_indices = @transform_7, window_bounds = array<i64: 32, 64>}, {pipeline_mode = #tpu.pipeline_mode<synchronous>, transform_indices = @transform_8, window_bounds = array<i64: 1, 64>}, {pipeline_mode = #tpu.pipeline_mode<synchronous>, transform_indices = @transform_9, window_bounds = array<i64: 64, 128>}, {pipeline_mode = #tpu.pipeline_mode<synchronous>, transform_indices = @transform_10, window_bounds = array<i64: 1, 128>}, {transform_indices = @transform_11, window_bounds = array<i64: 16, 128>}]} {
    %c0 = arith.constant 0 : index
    %c0_0 = arith.constant 0 : index
    %0 = vector.load %arg1[%c0, %c0_0] : memref<16x3072xbf16, #tpu.memory_space<vmem>>, vector<16x3072xbf16>
    %c0_1 = arith.constant 0 : index
    %c0_2 = arith.constant 0 : index
    %1 = vector.load %arg2[%c0_1, %c0_2] : memref<3072x8xbf16, #tpu.memory_space<vmem>>, vector<3072x8xbf16>
    %cst = arith.constant dense<0.000000e+00> : vector<16x8xf32>
    %2 = tpu.matmul %0, %1, %cst {dimension_numbers = #tpu.dot_dimension_numbers<[1], [0], [0], [1], [0, 0, 1, 1], [], []>} : vector<16x3072xbf16>, vector<3072x8xbf16>, vector<16x8xf32> -> vector<16x8xf32>
    %c0_3 = arith.constant 0 : index
    %c0_4 = arith.constant 0 : index
    %3 = vector.load %arg3[%c0_3, %c0_4] : memref<1x8xf32, #tpu.memory_space<vmem>>, vector<1x8xf32>
    %4 = vector.broadcast %3 : vector<1x8xf32> to vector<16x8xf32>
    %5 = arith.addf %2, %4 : vector<16x8xf32>
    %cst_5 = arith.constant 0.000000e+00 : f32
    %6 = vector.broadcast %cst_5 : f32 to vector<16x8xf32>
    %7 = arith.maximumf %5, %6 : vector<16x8xf32>
    %c0_6 = arith.constant 0 : index
    %c0_7 = arith.constant 0 : index
    %8 = vector.load %arg4[%c0_6, %c0_7] : memref<8x16xf32, #tpu.memory_space<vmem>>, vector<8x16xf32>
    %cst_8 = arith.constant dense<0.000000e+00> : vector<16x16xf32>
    %9 = tpu.matmul %7, %8, %cst_8 {dimension_numbers = #tpu.dot_dimension_numbers<[1], [0], [0], [1], [0, 0, 1, 1], [], []>} : vector<16x8xf32>, vector<8x16xf32>, vector<16x16xf32> -> vector<16x16xf32>
    %c0_9 = arith.constant 0 : index
    %c0_10 = arith.constant 0 : index
    %10 = vector.load %arg5[%c0_9, %c0_10] : memref<1x16xf32, #tpu.memory_space<vmem>>, vector<1x16xf32>
    %11 = vector.broadcast %10 : vector<1x16xf32> to vector<16x16xf32>
    %12 = arith.addf %9, %11 : vector<16x16xf32>
    %cst_11 = arith.constant 0.000000e+00 : f32
    %13 = vector.broadcast %cst_11 : f32 to vector<16x16xf32>
    %14 = arith.maximumf %12, %13 : vector<16x16xf32>
    %c0_12 = arith.constant 0 : index
    %c0_13 = arith.constant 0 : index
    %15 = vector.load %arg6[%c0_12, %c0_13] : memref<16x32xf32, #tpu.memory_space<vmem>>, vector<16x32xf32>
    %cst_14 = arith.constant dense<0.000000e+00> : vector<16x32xf32>
    %16 = tpu.matmul %14, %15, %cst_14 {dimension_numbers = #tpu.dot_dimension_numbers<[1], [0], [0], [1], [0, 0, 1, 1], [], []>} : vector<16x16xf32>, vector<16x32xf32>, vector<16x32xf32> -> vector<16x32xf32>
    %c0_15 = arith.constant 0 : index
    %c0_16 = arith.constant 0 : index
    %17 = vector.load %arg7[%c0_15, %c0_16] : memref<1x32xf32, #tpu.memory_space<vmem>>, vector<1x32xf32>
    %18 = vector.broadcast %17 : vector<1x32xf32> to vector<16x32xf32>
    %19 = arith.addf %16, %18 : vector<16x32xf32>
    %cst_17 = arith.constant 0.000000e+00 : f32
    %20 = vector.broadcast %cst_17 : f32 to vector<16x32xf32>
    %21 = arith.maximumf %19, %20 : vector<16x32xf32>
    %c0_18 = arith.constant 0 : index
    %c0_19 = arith.constant 0 : index
    %22 = vector.load %arg8[%c0_18, %c0_19] : memref<32x64xf32, #tpu.memory_space<vmem>>, vector<32x64xf32>
    %cst_20 = arith.constant dense<0.000000e+00> : vector<16x64xf32>
    %23 = tpu.matmul %21, %22, %cst_20 {dimension_numbers = #tpu.dot_dimension_numbers<[1], [0], [0], [1], [0, 0, 1, 1], [], []>} : vector<16x32xf32>, vector<32x64xf32>, vector<16x64xf32> -> vector<16x64xf32>
    %c0_21 = arith.constant 0 : index
    %c0_22 = arith.constant 0 : index
    %24 = vector.load %arg9[%c0_21, %c0_22] : memref<1x64xf32, #tpu.memory_space<vmem>>, vector<1x64xf32>
    %25 = vector.broadcast %24 : vector<1x64xf32> to vector<16x64xf32>
    %26 = arith.addf %23, %25 : vector<16x64xf32>
    %cst_23 = arith.constant 0.000000e+00 : f32
    %27 = vector.broadcast %cst_23 : f32 to vector<16x64xf32>
    %28 = arith.maximumf %26, %27 : vector<16x64xf32>
    %c0_24 = arith.constant 0 : index
    %c0_25 = arith.constant 0 : index
    %29 = vector.load %arg10[%c0_24, %c0_25] : memref<64x128xf32, #tpu.memory_space<vmem>>, vector<64x128xf32>
    %cst_26 = arith.constant dense<0.000000e+00> : vector<16x128xf32>
    %30 = tpu.matmul %28, %29, %cst_26 {dimension_numbers = #tpu.dot_dimension_numbers<[1], [0], [0], [1], [0, 0, 1, 1], [], []>} : vector<16x64xf32>, vector<64x128xf32>, vector<16x128xf32> -> vector<16x128xf32>
    %c0_27 = arith.constant 0 : index
    %c0_28 = arith.constant 0 : index
    %31 = vector.load %arg11[%c0_27, %c0_28] : memref<1x128xf32, #tpu.memory_space<vmem>>, vector<1x128xf32>
    %32 = vector.broadcast %31 : vector<1x128xf32> to vector<16x128xf32>
    %33 = arith.addf %30, %32 : vector<16x128xf32>
    %c0_29 = arith.constant 0 : index
    %c0_30 = arith.constant 0 : index
    %34 = vector.load %arg12[%c0_29, %c0_30] : memref<16x128xf32, #tpu.memory_space<vmem>>, vector<16x128xf32>
    tpu.vector_store %arg12[%c0_29, %c0_30], %33 {strides = array<i32>} : memref<16x128xf32, #tpu.memory_space<vmem>>, vector<16x128xf32>,
    return
  }
  func.func @transform_0(%arg0: i32) -> (i32, i32) {
    %c0_i32 = arith.constant 0 : i32
    %c0_i32_0 = arith.constant 0 : i32
    return %arg0, %c0_i32 : i32, i32
  }
  func.func @transform_1(%arg0: i32) -> (i32, i32) {
    %c0_i32 = arith.constant 0 : i32
    %c0_i32_0 = arith.constant 0 : i32
    %c0_i32_1 = arith.constant 0 : i32
    return %c0_i32, %c0_i32_0 : i32, i32
  }
  func.func @transform_2(%arg0: i32) -> (i32, i32) {
    %c0_i32 = arith.constant 0 : i32
    %c0_i32_0 = arith.constant 0 : i32
    %c0_i32_1 = arith.constant 0 : i32
    return %c0_i32, %c0_i32_0 : i32, i32
  }
  func.func @transform_3(%arg0: i32) -> (i32, i32) {
    %c0_i32 = arith.constant 0 : i32
    %c0_i32_0 = arith.constant 0 : i32
    %c0_i32_1 = arith.constant 0 : i32
    return %c0_i32, %c0_i32_0 : i32, i32
  }
  func.func @transform_4(%arg0: i32) -> (i32, i32) {
    %c0_i32 = arith.constant 0 : i32
    %c0_i32_0 = arith.constant 0 : i32
    %c0_i32_1 = arith.constant 0 : i32
    return %c0_i32, %c0_i32_0 : i32, i32
  }
  func.func @transform_5(%arg0: i32) -> (i32, i32) {
    %c0_i32 = arith.constant 0 : i32
    %c0_i32_0 = arith.constant 0 : i32
    %c0_i32_1 = arith.constant 0 : i32
    return %c0_i32, %c0_i32_0 : i32, i32
  }
  func.func @transform_6(%arg0: i32) -> (i32, i32) {
    %c0_i32 = arith.constant 0 : i32
    %c0_i32_0 = arith.constant 0 : i32
    %c0_i32_1 = arith.constant 0 : i32
    return %c0_i32, %c0_i32_0 : i32, i32
  }
  func.func @transform_7(%arg0: i32) -> (i32, i32) {
    %c0_i32 = arith.constant 0 : i32
    %c0_i32_0 = arith.constant 0 : i32
    %c0_i32_1 = arith.constant 0 : i32
    return %c0_i32, %c0_i32_0 : i32, i32
  }
  func.func @transform_8(%arg0: i32) -> (i32, i32) {
    %c0_i32 = arith.constant 0 : i32
    %c0_i32_0 = arith.constant 0 : i32
    %c0_i32_1 = arith.constant 0 : i32
    return %c0_i32, %c0_i32_0 : i32, i32
  }
  func.func @transform_9(%arg0: i32) -> (i32, i32) {
    %c0_i32 = arith.constant 0 : i32
    %c0_i32_0 = arith.constant 0 : i32
    %c0_i32_1 = arith.constant 0 : i32
    return %c0_i32, %c0_i32_0 : i32, i32
  }
  func.func @transform_10(%arg0: i32) -> (i32, i32) {
    %c0_i32 = arith.constant 0 : i32
    %c0_i32_0 = arith.constant 0 : i32
    %c0_i32_1 = arith.constant 0 : i32
    return %c0_i32, %c0_i32_0 : i32, i32
  }
  func.func @transform_11(%arg0: i32) -> (i32, i32) {
    %c0_i32 = arith.constant 0 : i32
    %c0_i32_0 = arith.constant 0 : i32
    return %arg0, %c0_i32 : i32, i32
  }
}

</mosaic_0001>

<bundles_post_ra>
// kernel: tpu_custom_call.1
= control target key start
LH: loop header
LB: loop body
LE: loop exit
PB: predicated region body
PF: predicated region fallthrough
CT: control target
= control target key end

     0   :  { %s4204_s0 = inlined_call_operand.vmem [shape: bf16[16,3072], index: 0, kind: input, shape index: {}]   ;;  %s4205_s1 = inlined_call_operand.vmem [shape: bf16[3072,8], index: 1, kind: input, shape index: {}]   ;;  %s4206_s2 = inlined_call_operand.vmem [shape: f32[1,8], index: 2, kind: input, shape index: {}]   ;;  %s4207_s3 = inlined_call_operand.vmem [shape: f32[8,16], index: 3, kind: input, shape index: {}]   ;;  %s4208_s4 = inlined_call_operand.vmem [shape: f32[1,16], index: 4, kind: input, shape index: {}]   ;;  %s4209_s5 = inlined_call_operand.vmem [shape: f32[16,32], index: 5, kind: input, shape index: {}]   ;;  %s4210_s6 = inlined_call_operand.vmem [shape: f32[1,32], index: 6, kind: input, shape index: {}]   ;;  %s4211_s7 = inlined_call_operand.vmem [shape: f32[32,64], index: 7, kind: input, shape index: {}]   ;;  %s4212_s8 = inlined_call_operand.vmem [shape: f32[1,64], index: 8, kind: input, shape index: {}]   ;;  %s4213_s9 = inlined_call_operand.vmem [shape: f32[64,128], index: 9, kind: input, shape index: {}]   ;;  %s4214_s10 = inlined_call_operand.vmem [shape: f32[1,128], index: 10, kind: input, shape index: {}]   ;;  %s4215_s11 = inlined_call_operand.hbm [shape: f32[16,128], index: 11, kind: output, shape index: {}]  }
   0x1   :  { %v3205_v0 = vld [vmem:[%s4205_s1 + $0x40] sm:$0xff]   ;;  %v3209_v4 = vld [vmem:[%s4205_s1 + $0x48] sm:$0xff]   ;;  %v3213_v8 = vld [vmem:[%s4205_s1 + $0x50] sm:$0xff]  }
   0x2   :  { %v3206_v1 = vld [vmem:[%s4205_s1 + $0xc0] sm:$0xff]   ;;  %2845 = vmatprep.subr.bf16.mxu0 %v3205_v0  ;;  %v3210_v5 = vld [vmem:[%s4205_s1 + $0xc8] sm:$0xff]   ;;  %v3214_v9 = vld [vmem:[%s4205_s1 + $0xd0] sm:$0xff]  }
   0x3   :  { %v3207_v2 = vld [vmem:[%s4205_s1] sm:$0xff]   ;;  %2867 = vmatprep.subr.bf16.mxu1 %v3206_v1  ;;  %v3211_v6 = vld [vmem:[%s4205_s1 + $0x8] sm:$0xff]   ;;  %v3215_v10 = vld [vmem:[%s4205_s1 + $0x10] sm:$0xff]  }
   0x4   :  { %v3208_v3 = vld [vmem:[%s4205_s1 + $0x80] sm:$0xff]   ;;  %2846 = vmatpush3.bf16.msra.mxu0 %v3207_v2  ;;  %v3212_v7 = vld [vmem:[%s4205_s1 + $0x88] sm:$0xff]   ;;  %v3216_v11 = vld [vmem:[%s4205_s1 + $0x90] sm:$0xff]  }
   0x5   :  { %2868 = vmatpush3.bf16.msra.mxu1 %v3208_v3  ;;  %2847 = vmatprep.subr.bf16.mxu0 %v3209_v4  ;;  %v3217_v12 = vld [vmem:[%s4205_s1 + $0x58] sm:$0xff]   ;;  %v3221_v16 = vld [vmem:[%s4205_s1 + $0x60] sm:$0xff]   ;;  %v3225_v20 = vld [vmem:[%s4205_s1 + $0x68] sm:$0xff]  }
   0x6   :  { %2869 = vmatprep.subr.bf16.mxu1 %v3210_v5  ;;  %v3218_v13 = vld [vmem:[%s4205_s1 + $0xd8] sm:$0xff]   ;;  %v3222_v17 = vld [vmem:[%s4205_s1 + $0xe0] sm:$0xff]   ;;  %v3226_v21 = vld [vmem:[%s4205_s1 + $0xe8] sm:$0xff]  }
   0x7   :  { %v3219_v14 = vld [vmem:[%s4205_s1 + $0x18] sm:$0xff]   ;;  %v3223_v18 = vld [vmem:[%s4205_s1 + $0x20] sm:$0xff]   ;;  %v3227_v22 = vld [vmem:[%s4205_s1 + $0x28] sm:$0xff]  }
   0x8   :  { %2848 = vmatpush3.bf16.msra.mxu0 %v3211_v6  ;;  %v3220_v15 = vld [vmem:[%s4205_s1 + $0x98] sm:$0xff]   ;;  %v3224_v19 = vld [vmem:[%s4205_s1 + $0xa0] sm:$0xff]   ;;  %v3228_v23 = vld [vmem:[%s4205_s1 + $0xa8] sm:$0xff]  }
   0x9   :  { %2870 = vmatpush3.bf16.msra.mxu1 %v3212_v7  ;;  %2849 = vmatprep.subr.bf16.mxu0 %v3213_v8  ;;  %v3229_v24 = vld [vmem:[%s4205_s1 + $0x70] sm:$0xff]   ;;  %v3233_v28 = vld [vmem:[%s4205_s1 + $0x78] sm:$0xff]   ;;  %v40_v32 = vld [vmem:[%s4204_s0] sm:$0xff] }
   0xa   :  { %2871 = vmatprep.subr.bf16.mxu1 %v3214_v9  ;;  %v3230_v25 = vld [vmem:[%s4205_s1 + $0xf0] sm:$0xff]   ;;  %v3234_v29 = vld [vmem:[%s4205_s1 + $0xf8] sm:$0xff]   ;;  %v52_v33 = vld [vmem:[%s4204_s0 + $0x60] sm:$0xff] }
   0xb   :  { %v3231_v26 = vld [vmem:[%s4205_s1 + $0x30] sm:$0xff]   ;;  %v3235_v30 = vld [vmem:[%s4205_s1 + $0x38] sm:$0xff]   ;;  %v41_v34 = vld [vmem:[%s4204_s0 + $0x8] sm:$0xff]  ;;  %v2617_v35 = vcombine.low %v40_v32, %v52_v33  ;;  %v2618_v36 = vcombine.high %v40_v32, %v52_v33 }
   0xc   :  { %2850 = vmatpush3.bf16.msra.mxu0 %v3215_v10  ;;  %v3232_v27 = vld [vmem:[%s4205_s1 + $0xb0] sm:$0xff]   ;;  %v3236_v31 = vld [vmem:[%s4205_s1 + $0xb8] sm:$0xff]   ;;  %v53_v37 = vld [vmem:[%s4204_s0 + $0x68] sm:$0xff] }
   0xd   :  { %2872 = vmatpush3.bf16.msra.mxu1 %v3216_v11  ;;  %2851 = vmatprep.subr.bf16.mxu0 %v3217_v12  ;;  %v2619_v38 = vcombine.low %v41_v34, %v53_v37  ;;  %v2620_v39 = vcombine.high %v41_v34, %v53_v37  ;;  %v3237_v40 = vld [vmem:[%s4205_s1 + $0x140] sm:$0xff]   ;;  %v3241_v44 = vld [vmem:[%s4205_s1 + $0x148] sm:$0xff]   ;;  %v3245_v48 = vld [vmem:[%s4205_s1 + $0x150] sm:$0xff]  }
   0xe   :  { %2873 = vmatprep.subr.bf16.mxu1 %v3218_v13  ;;  %1759 = vmatprep.mubr.bf16.mxu0 %v2618_v36  ;;  %v3238_v41 = vld [vmem:[%s4205_s1 + $0x1c0] sm:$0xff]   ;;  %v3242_v45 = vld [vmem:[%s4205_s1 + $0x1c8] sm:$0xff]   ;;  %v3246_v49 = vld [vmem:[%s4205_s1 + $0x1d0] sm:$0xff]  }
   0xf   :  { %1800 = vmatprep.mubr.bf16.mxu1 %v2620_v39  ;;  %v3239_v42 = vld [vmem:[%s4205_s1 + $0x100] sm:$0xff]   ;;  %v3243_v46 = vld [vmem:[%s4205_s1 + $0x108] sm:$0xff]   ;;  %v3247_v50 = vld [vmem:[%s4205_s1 + $0x110] sm:$0xff]  }
  0x10   :  { %2852 = vmatpush3.bf16.msra.mxu0 %v3219_v14  ;;  %v3240_v43 = vld [vmem:[%s4205_s1 + $0x180] sm:$0xff]   ;;  %v3244_v47 = vld [vmem:[%s4205_s1 + $0x188] sm:$0xff]   ;;  %v3248_v51 = vld [vmem:[%s4205_s1 + $0x190] sm:$0xff]  }
  0x11   :  { %2874 = vmatpush3.bf16.msra.mxu1 %v3220_v15  ;;  %2853 = vmatprep.subr.bf16.mxu0 %v3221_v16  ;;  %v3249_v52 = vld [vmem:[%s4205_s1 + $0x158] sm:$0xff]   ;;  %v3253_v56 = vld [vmem:[%s4205_s1 + $0x160] sm:$0xff]   ;;  %v3257_v60 = vld [vmem:[%s4205_s1 + $0x168] sm:$0xff]  }
  0x12   :  { %2875 = vmatprep.subr.bf16.mxu1 %v3222_v17  ;;  %v3250_v53 = vld [vmem:[%s4205_s1 + $0x1d8] sm:$0xff]   ;;  %v3254_v57 = vld [vmem:[%s4205_s1 + $0x1e0] sm:$0xff]   ;;  %v3258_v61 = vld [vmem:[%s4205_s1 + $0x1e8] sm:$0xff]  }
  0x13   :  { %v3251_v54 = vld [vmem:[%s4205_s1 + $0x118] sm:$0xff]   ;;  %v3255_v58 = vld [vmem:[%s4205_s1 + $0x120] sm:$0xff]   ;;  %v3259_v62 = vld [vmem:[%s4205_s1 + $0x128] sm:$0xff]  }
  0x14   :  { %2854 = vmatpush3.bf16.msra.mxu0 %v3223_v18  ;;  %v3252_v55 = vld [vmem:[%s4205_s1 + $0x198] sm:$0xff]   ;;  %v3256_v59 = vld [vmem:[%s4205_s1 + $0x1a0] sm:$0xff]   ;;  %v3260_v63 = vld [vmem:[%s4205_s1 + $0x1a8] sm:$0xff]  }
  0x15   :  { %2876 = vmatpush3.bf16.msra.mxu1 %v3224_v19  ;;  %2855 = vmatprep.subr.bf16.mxu0 %v3225_v20  ;;  %v3261_v0 = vld [vmem:[%s4205_s1 + $0x170] sm:$0xff]   ;;  %v3265_v4 = vld [vmem:[%s4205_s1 + $0x178] sm:$0xff]   ;;  %v3269_v16 = vld [vmem:[%s4205_s1 + $0x240] sm:$0xff]  }
  0x16   :  { %2877 = vmatprep.subr.bf16.mxu1 %v3226_v21  ;;  %v3262_v1 = vld [vmem:[%s4205_s1 + $0x1f0] sm:$0xff]   ;;  %v3266_v5 = vld [vmem:[%s4205_s1 + $0x1f8] sm:$0xff]   ;;  %v3270_v17 = vld [vmem:[%s4205_s1 + $0x2c0] sm:$0xff]  }
  0x17   :  { %v3263_v2 = vld [vmem:[%s4205_s1 + $0x130] sm:$0xff]   ;;  %v3267_v6 = vld [vmem:[%s4205_s1 + $0x138] sm:$0xff]   ;;  %v3271_v18 = vld [vmem:[%s4205_s1 + $0x200] sm:$0xff]  }
  0x18   :  { %2856 = vmatpush3.bf16.msra.mxu0 %v3227_v22  ;;  %v3264_v3 = vld [vmem:[%s4205_s1 + $0x1b0] sm:$0xff]   ;;  %v3268_v7 = vld [vmem:[%s4205_s1 + $0x1b8] sm:$0xff]   ;;  %v3272_v19 = vld [vmem:[%s4205_s1 + $0x280] sm:$0xff]  }
  0x19   :  { %2878 = vmatpush3.bf16.msra.mxu1 %v3228_v23  ;;  %2857 = vmatprep.subr.bf16.mxu0 %v3229_v24  ;;  %v42_v8 = vld [vmem:[%s4204_s0 + $0x10] sm:$0xff]  ;;  %v43_v12 = vld [vmem:[%s4204_s0 + $0x18] sm:$0xff]  ;;  %v3273_v20 = vld [vmem:[%s4205_s1 + $0x248] sm:$0xff]  }
  0x1a   :  { %2879 = vmatprep.subr.bf16.mxu1 %v3230_v25  ;;  %v54_v9 = vld [vmem:[%s4204_s0 + $0x70] sm:$0xff]  ;;  %v55_v13 = vld [vmem:[%s4204_s0 + $0x78] sm:$0xff]  ;;  %v3274_v21 = vld [vmem:[%s4205_s1 + $0x2c8] sm:$0xff]  }
  0x1b   :  { %v2621_v10 = vcombine.low %v42_v8, %v54_v9  ;;  %v2622_v11 = vcombine.high %v42_v8, %v54_v9  ;;  %v2623_v14 = vcombine.low %v43_v12, %v55_v13  ;;  %v2624_v15 = vcombine.high %v43_v12, %v55_v13  ;;  %v3275_v22 = vld [vmem:[%s4205_s1 + $0x208] sm:$0xff]   ;;  %v3277_v24 = vld [vmem:[%s4205_s1 + $0x250] sm:$0xff]   ;;  %v3285_v32 = vld [vmem:[%s4205_s1 + $0x260] sm:$0xff]  }
  0x1c   :  { %2858 = vmatpush3.bf16.msra.mxu0 %v3231_v26  ;;  %v3276_v23 = vld [vmem:[%s4205_s1 + $0x288] sm:$0xff]   ;;  %v3278_v25 = vld [vmem:[%s4205_s1 + $0x2d0] sm:$0xff]   ;;  %v3286_v33 = vld [vmem:[%s4205_s1 + $0x2e0] sm:$0xff]  }
  0x1d   :  { %2880 = vmatpush3.bf16.msra.mxu1 %v3232_v27  ;;  %2859 = vmatprep.subr.bf16.mxu0 %v3233_v28  ;;  %v3279_v26 = vld [vmem:[%s4205_s1 + $0x210] sm:$0xff]   ;;  %v3281_v28 = vld [vmem:[%s4205_s1 + $0x258] sm:$0xff]   ;;  %v3287_v34 = vld [vmem:[%s4205_s1 + $0x220] sm:$0xff]  }
  0x1e   :  { %2881 = vmatprep.subr.bf16.mxu1 %v3234_v29  ;;  %v3280_v27 = vld [vmem:[%s4205_s1 + $0x290] sm:$0xff]   ;;  %v3282_v29 = vld [vmem:[%s4205_s1 + $0x2d8] sm:$0xff]   ;;  %v3289_v36 = vld [vmem:[%s4205_s1 + $0x268] sm:$0xff]  }
  0x1f   :  { %v3290_v37 = vld [vmem:[%s4205_s1 + $0x2e8] sm:$0xff]   ;;  %v3317_v8 = vld [vmem:[%s4205_s1 + $0x360] sm:$0xff]  }
  0x20   :  { %2860 = vmatpush3.bf16.msra.mxu0 %v3235_v30  ;;  %v3283_v30 = vld [vmem:[%s4205_s1 + $0x218] sm:$0xff]   ;;  %v3292_v39 = vld [vmem:[%s4205_s1 + $0x2a8] sm:$0xff]   ;;  %v3318_v9 = vld [vmem:[%s4205_s1 + $0x3e0] sm:$0xff]  }
  0x21   :  { %2882 = vmatpush3.bf16.msra.mxu1 %v3236_v31  ;;  %2889 = vmatprep.subr.bf16.mxu0 %v3237_v40  ;;  %v3284_v31 = vld [vmem:[%s4205_s1 + $0x298] sm:$0xff]   ;;  %v3293_v40 = vld [vmem:[%s4205_s1 + $0x270] sm:$0xff]   ;;  %v3321_v12 = vld [vmem:[%s4205_s1 + $0x368] sm:$0xff]  }
  0x22   :  { %2911 = vmatprep.subr.bf16.mxu1 %v3238_v41  ;;  %v3294_v41 = vld [vmem:[%s4205_s1 + $0x2f0] sm:$0xff]   ;;  %v3322_v13 = vld [vmem:[%s4205_s1 + $0x3e8] sm:$0xff]  }
  0x23   :  { %1760 = vmatmul.mubr.bf16.vlgmr.msra.gmra.mrb[0].mxu0 %v2617_v35  ;;  %v3288_v35 = vld [vmem:[%s4205_s1 + $0x2a0] sm:$0xff]  }
  0x24   :  { %1801 = vmatmul.mubr.bf16.vlgmr.msra.gmra.mrb[0].mxu1 %v2619_v38  ;;  %2890 = vmatpush3.bf16.msra.mxu0 %v3239_v42  ;;  %v3291_v38 = vld [vmem:[%s4205_s1 + $0x228] sm:$0xff]   ;;  %v3295_v42 = vld [vmem:[%s4205_s1 + $0x230] sm:$0xff]  }
  0x25   :  { %2912 = vmatpush3.bf16.msra.mxu1 %v3240_v43  ;;  %2891 = vmatprep.subr.bf16.mxu0 %v3241_v44  ;;  %v3296_v43 = vld [vmem:[%s4205_s1 + $0x2b0] sm:$0xff]   ;;  %v3297_v44 = vld [vmem:[%s4205_s1 + $0x278] sm:$0xff]  }
  0x26   :  { %2913 = vmatprep.subr.bf16.mxu1 %v3242_v45  ;;  %1841 = vmatprep.mubr.bf16.mxu0 %v2622_v11  ;;  %v3298_v45 = vld [vmem:[%s4205_s1 + $0x2f8] sm:$0xff]   ;;  %v3320_v11 = vld [vmem:[%s4205_s1 + $0x3a0] sm:$0xff]  }
  0x27   :  { %1882 = vmatprep.mubr.bf16.mxu1 %v2624_v15  ;;  %v3324_v15 = vld [vmem:[%s4205_s1 + $0x3a8] sm:$0xff]  }
  0x28   :  { %2892 = vmatpush3.bf16.msra.mxu0 %v3243_v46  ;;  %v3299_v46 = vld [vmem:[%s4205_s1 + $0x238] sm:$0xff]  }
  0x29   :  { %2914 = vmatpush3.bf16.msra.mxu1 %v3244_v47  ;;  %2893 = vmatprep.subr.bf16.mxu0 %v3245_v48  ;;  %v3300_v47 = vld [vmem:[%s4205_s1 + $0x2b8] sm:$0xff]   ;;  %v44_v48 = vld [vmem:[%s4204_s0 + $0x20] sm:$0xff] }
  0x2a   :  { %2915 = vmatprep.subr.bf16.mxu1 %v3246_v49  ;;  %v56_v49 = vld [vmem:[%s4204_s0 + $0x80] sm:$0xff] }
  0x2c   :  { %2894 = vmatpush3.bf16.msra.mxu0 %v3247_v50  ;;  %v45_v50 = vld [vmem:[%s4204_s0 + $0x28] sm:$0xff] }
  0x2d   :  { %2916 = vmatpush3.bf16.msra.mxu1 %v3248_v51  ;;  %2895 = vmatprep.subr.bf16.mxu0 %v3249_v52  ;;  %v57_v51 = vld [vmem:[%s4204_s0 + $0x88] sm:$0xff]  ;;  %v2625_v52 = vcombine.low %v44_v48, %v56_v49 }
  0x2e   :  { %2917 = vmatprep.subr.bf16.mxu1 %v3250_v53  ;;  %v2626_v53 = vcombine.high %v44_v48, %v56_v49  ;;  %v3349_v48 = vld [vmem:[%s4205_s1 + $0x460] sm:$0xff]  }
  0x2f   :  { %v3350_v49 = vld [vmem:[%s4205_s1 + $0x4e0] sm:$0xff]  }
  0x30   :  { %2896 = vmatpush3.bf16.msra.mxu0 %v3251_v54  ;;  %v2627_v54 = vcombine.low %v45_v50, %v57_v51 }
  0x31   :  { %2918 = vmatpush3.bf16.msra.mxu1 %v3252_v55  ;;  %2897 = vmatprep.subr.bf16.mxu0 %v3253_v56  ;;  %v2628_v55 = vcombine.high %v45_v50, %v57_v51  ;;  %v3301_v56 = vld [vmem:[%s4205_s1 + $0x340] sm:$0xff]  }
  0x32   :  { %2919 = vmatprep.subr.bf16.mxu1 %v3254_v57  ;;  %v3302_v57 = vld [vmem:[%s4205_s1 + $0x3c0] sm:$0xff]  }
  0x33   :  { %v3351_v50 = vld [vmem:[%s4205_s1 + $0x420] sm:$0xff]  }
  0x34   :  { %2898 = vmatpush3.bf16.msra.mxu0 %v3255_v58  ;;  %v3303_v58 = vld [vmem:[%s4205_s1 + $0x300] sm:$0xff]  }
  0x35   :  { %2920 = vmatpush3.bf16.msra.mxu1 %v3256_v59  ;;  %2899 = vmatprep.subr.bf16.mxu0 %v3257_v60  ;;  %v3304_v59 = vld [vmem:[%s4205_s1 + $0x380] sm:$0xff]   ;;  %v3305_v60 = vld [vmem:[%s4205_s1 + $0x348] sm:$0xff]  }
  0x36   :  { %2921 = vmatprep.subr.bf16.mxu1 %v3258_v61  ;;  %v3306_v61 = vld [vmem:[%s4205_s1 + $0x3c8] sm:$0xff]   ;;  %v3352_v51 = vld [vmem:[%s4205_s1 + $0x4a0] sm:$0xff]  }
  0x38   :  { %2900 = vmatpush3.bf16.msra.mxu0 %v3259_v62  ;;  %v3307_v62 = vld [vmem:[%s4205_s1 + $0x308] sm:$0xff]  }
  0x39   :  { %2922 = vmatpush3.bf16.msra.mxu1 %v3260_v63  ;;  %2901 = vmatprep.subr.bf16.mxu0 %v3261_v0  ;;  %v3308_v63 = vld [vmem:[%s4205_s1 + $0x388] sm:$0xff]   ;;  %v3309_v0 = vld [vmem:[%s4205_s1 + $0x350] sm:$0xff]  }
  0x3a   :  { %2923 = vmatprep.subr.bf16.mxu1 %v3262_v1  ;;  %v3310_v1 = vld [vmem:[%s4205_s1 + $0x3d0] sm:$0xff]  }
  0x3c   :  { %2902 = vmatpush3.bf16.msra.mxu0 %v3263_v2  ;;  %v3311_v2 = vld [vmem:[%s4205_s1 + $0x310] sm:$0xff]  }
  0x3d   :  { %2924 = vmatpush3.bf16.msra.mxu1 %v3264_v3  ;;  %2903 = vmatprep.subr.bf16.mxu0 %v3265_v4  ;;  %v3312_v3 = vld [vmem:[%s4205_s1 + $0x390] sm:$0xff]   ;;  %v3313_v4 = vld [vmem:[%s4205_s1 + $0x358] sm:$0xff]  }
  0x3e   :  { %2925 = vmatprep.subr.bf16.mxu1 %v3266_v5  ;;  %v3314_v5 = vld [vmem:[%s4205_s1 + $0x3d8] sm:$0xff]  }
  0x40   :  { %2904 = vmatpush3.bf16.msra.mxu0 %v3267_v6  ;;  %v3315_v6 = vld [vmem:[%s4205_s1 + $0x318] sm:$0xff]  }
  0x41   :  { %2926 = vmatpush3.bf16.msra.mxu1 %v3268_v7  ;;  %2933 = vmatprep.subr.bf16.mxu0 %v3269_v16  ;;  %v3316_v7 = vld [vmem:[%s4205_s1 + $0x398] sm:$0xff]   ;;  %v3325_v16 = vld [vmem:[%s4205_s1 + $0x370] sm:$0xff]  }
  0x42   :  { %2955 = vmatprep.subr.bf16.mxu1 %v3270_v17  ;;  %v3326_v17 = vld [vmem:[%s4205_s1 + $0x3f0] sm:$0xff]  }
  0x43   :  { %1842 = vmatmul.mubr.bf16.vlgmr.msra.gmra.mrb[4].mxu0 %v2621_v10  ;;  %v3319_v10 = vld [vmem:[%s4205_s1 + $0x320] sm:$0xff]  }
  0x44   :  { %1883 = vmatmul.mubr.bf16.vlgmr.msra.gmra.mrb[4].mxu1 %v2623_v14  ;;  %2934 = vmatpush3.bf16.msra.mxu0 %v3271_v18  ;;  %v3323_v14 = vld [vmem:[%s4205_s1 + $0x328] sm:$0xff]   ;;  %v3327_v18 = vld [vmem:[%s4205_s1 + $0x330] sm:$0xff]  }
  0x45   :  { %2956 = vmatpush3.bf16.msra.mxu1 %v3272_v19  ;;  %2935 = vmatprep.subr.bf16.mxu0 %v3273_v20  ;;  %v3328_v19 = vld [vmem:[%s4205_s1 + $0x3b0] sm:$0xff]   ;;  %v3329_v20 = vld [vmem:[%s4205_s1 + $0x378] sm:$0xff]  }
  0x46   :  { %2957 = vmatprep.subr.bf16.mxu1 %v3274_v21  ;;  %1923 = vmatprep.mubr.bf16.mxu0 %v2626_v53  ;;  %v3330_v21 = vld [vmem:[%s4205_s1 + $0x3f8] sm:$0xff]   ;;  %v3354_v53 = vld [vmem:[%s4205_s1 + $0x4e8] sm:$0xff]  }
  0x47   :  { %1964 = vmatprep.mubr.bf16.mxu1 %v2628_v55  ;;  %v3356_v55 = vld [vmem:[%s4205_s1 + $0x4a8] sm:$0xff]  }
  0x48   :  { %2936 = vmatpush3.bf16.msra.mxu0 %v3275_v22  ;;  %v3331_v22 = vld [vmem:[%s4205_s1 + $0x338] sm:$0xff]  }
  0x49   :  { %2958 = vmatpush3.bf16.msra.mxu1 %v3276_v23  ;;  %2937 = vmatprep.subr.bf16.mxu0 %v3277_v24  ;;  %v3332_v23 = vld [vmem:[%s4205_s1 + $0x3b8] sm:$0xff]   ;;  %v46_v24 = vld [vmem:[%s4204_s0 + $0x30] sm:$0xff] }
  0x4a   :  { %2959 = vmatprep.subr.bf16.mxu1 %v3278_v25  ;;  %v58_v25 = vld [vmem:[%s4204_s0 + $0x90] sm:$0xff] }
  0x4c   :  { %2938 = vmatpush3.bf16.msra.mxu0 %v3279_v26  ;;  %v47_v26 = vld [vmem:[%s4204_s0 + $0x38] sm:$0xff] }
  0x4d   :  { %2960 = vmatpush3.bf16.msra.mxu1 %v3280_v27  ;;  %2939 = vmatprep.subr.bf16.mxu0 %v3281_v28  ;;  %v2629_v27 = vcombine.low %v46_v24, %v58_v25  ;;  %v2630_v28 = vcombine.high %v46_v24, %v58_v25  ;;  %v3381_v24 = vld [vmem:[%s4205_s1 + $0x560] sm:$0xff]  }
  0x4e   :  { %2961 = vmatprep.subr.bf16.mxu1 %v3282_v29  ;;  %v59_v29 = vld [vmem:[%s4204_s0 + $0x98] sm:$0xff]  ;;  %v3382_v25 = vld [vmem:[%s4205_s1 + $0x5e0] sm:$0xff]  }
  0x50   :  { %2940 = vmatpush3.bf16.msra.mxu0 %v3283_v30  ;;  %v2631_v30 = vcombine.low %v47_v26, %v59_v29 }
  0x51   :  { %2962 = vmatpush3.bf16.msra.mxu1 %v3284_v31  ;;  %2941 = vmatprep.subr.bf16.mxu0 %v3285_v32  ;;  %v2632_v31 = vcombine.high %v47_v26, %v59_v29  ;;  %v3333_v32 = vld [vmem:[%s4205_s1 + $0x440] sm:$0xff]   ;;  %v3386_v29 = vld [vmem:[%s4205_s1 + $0x5e8] sm:$0xff]  }
  0x52   :  { %2963 = vmatprep.subr.bf16.mxu1 %v3286_v33  ;;  %v3334_v33 = vld [vmem:[%s4205_s1 + $0x4c0] sm:$0xff]  }
  0x53   :  { %v3383_v26 = vld [vmem:[%s4205_s1 + $0x520] sm:$0xff]  }
  0x54   :  { %2942 = vmatpush3.bf16.msra.mxu0 %v3287_v34  ;;  %v3335_v34 = vld [vmem:[%s4205_s1 + $0x400] sm:$0xff]  }
  0x55   :  { %2964 = vmatpush3.bf16.msra.mxu1 %v3288_v35  ;;  %2943 = vmatprep.subr.bf16.mxu0 %v3289_v36  ;;  %v3336_v35 = vld [vmem:[%s4205_s1 + $0x480] sm:$0xff]   ;;  %v3337_v36 = vld [vmem:[%s4205_s1 + $0x448] sm:$0xff]  }
  0x56   :  { %2965 = vmatprep.subr.bf16.mxu1 %v3290_v37  ;;  %v3338_v37 = vld [vmem:[%s4205_s1 + $0x4c8] sm:$0xff]  }
  0x58   :  { %2944 = vmatpush3.bf16.msra.mxu0 %v3291_v38  ;;  %v3339_v38 = vld [vmem:[%s4205_s1 + $0x408] sm:$0xff]  }
  0x59   :  { %2966 = vmatpush3.bf16.msra.mxu1 %v3292_v39  ;;  %2945 = vmatprep.subr.bf16.mxu0 %v3293_v40  ;;  %v3340_v39 = vld [vmem:[%s4205_s1 + $0x488] sm:$0xff]   ;;  %v3341_v40 = vld [vmem:[%s4205_s1 + $0x450] sm:$0xff]  }
  0x5a   :  { %2967 = vmatprep.subr.bf16.mxu1 %v3294_v41  ;;  %v3342_v41 = vld [vmem:[%s4205_s1 + $0x4d0] sm:$0xff]  }
  0x5c   :  { %2946 = vmatpush3.bf16.msra.mxu0 %v3295_v42  ;;  %v3343_v42 = vld [vmem:[%s4205_s1 + $0x410] sm:$0xff]  }
  0x5d   :  { %2968 = vmatpush3.bf16.msra.mxu1 %v3296_v43  ;;  %2947 = vmatprep.subr.bf16.mxu0 %v3297_v44  ;;  %v3344_v43 = vld [vmem:[%s4205_s1 + $0x490] sm:$0xff]   ;;  %v3345_v44 = vld [vmem:[%s4205_s1 + $0x458] sm:$0xff]  }
  0x5e   :  { %2969 = vmatprep.subr.bf16.mxu1 %v3298_v45  ;;  %v3346_v45 = vld [vmem:[%s4205_s1 + $0x4d8] sm:$0xff]  }
  0x60   :  { %2948 = vmatpush3.bf16.msra.mxu0 %v3299_v46  ;;  %v3347_v46 = vld [vmem:[%s4205_s1 + $0x418] sm:$0xff]  }
  0x61   :  { %2970 = vmatpush3.bf16.msra.mxu1 %v3300_v47  ;;  %2977 = vmatprep.subr.bf16.mxu0 %v3301_v56  ;;  %v3348_v47 = vld [vmem:[%s4205_s1 + $0x498] sm:$0xff]   ;;  %v3357_v56 = vld [vmem:[%s4205_s1 + $0x470] sm:$0xff]  }
  0x62   :  { %2999 = vmatprep.subr.bf16.mxu1 %v3302_v57  ;;  %v3358_v57 = vld [vmem:[%s4205_s1 + $0x4f0] sm:$0xff]  }
  0x63   :  { %1924 = vmatmul.mubr.bf16.vlgmr.msra.gmra.mrb[8].mxu0 %v2625_v52  ;;  %v3353_v52 = vld [vmem:[%s4205_s1 + $0x468] sm:$0xff]  }
  0x64   :  { %1965 = vmatmul.mubr.bf16.vlgmr.msra.gmra.mrb[8].mxu1 %v2627_v54  ;;  %2978 = vmatpush3.bf16.msra.mxu0 %v3303_v58  ;;  %v3355_v54 = vld [vmem:[%s4205_s1 + $0x428] sm:$0xff]   ;;  %v3359_v58 = vld [vmem:[%s4205_s1 + $0x430] sm:$0xff]  }
  0x65   :  { %3000 = vmatpush3.bf16.msra.mxu1 %v3304_v59  ;;  %2979 = vmatprep.subr.bf16.mxu0 %v3305_v60  ;;  %v3360_v59 = vld [vmem:[%s4205_s1 + $0x4b0] sm:$0xff]   ;;  %v3361_v60 = vld [vmem:[%s4205_s1 + $0x478] sm:$0xff]  }
  0x66   :  { %3001 = vmatprep.subr.bf16.mxu1 %v3306_v61  ;;  %2005 = vmatprep.mubr.bf16.mxu0 %v2630_v28  ;;  %v3362_v61 = vld [vmem:[%s4205_s1 + $0x4f8] sm:$0xff]   ;;  %v3385_v28 = vld [vmem:[%s4205_s1 + $0x568] sm:$0xff]  }
  0x67   :  { %2046 = vmatprep.mubr.bf16.mxu1 %v2632_v31  ;;  %v3388_v31 = vld [vmem:[%s4205_s1 + $0x5a8] sm:$0xff]  }
  0x68   :  { %2980 = vmatpush3.bf16.msra.mxu0 %v3307_v62  ;;  %v3363_v62 = vld [vmem:[%s4205_s1 + $0x438] sm:$0xff]  }
  0x69   :  { %3002 = vmatpush3.bf16.msra.mxu1 %v3308_v63  ;;  %2981 = vmatprep.subr.bf16.mxu0 %v3309_v0  ;;  %v3364_v63 = vld [vmem:[%s4205_s1 + $0x4b8] sm:$0xff]   ;;  %v48_v0 = vld [vmem:[%s4204_s0 + $0x40] sm:$0xff] }
  0x6a   :  { %3003 = vmatprep.subr.bf16.mxu1 %v3310_v1  ;;  %v60_v1 = vld [vmem:[%s4204_s0 + $0xa0] sm:$0xff] }
  0x6c   :  { %2982 = vmatpush3.bf16.msra.mxu0 %v3311_v2  ;;  %v2633_v2 = vcombine.low %v48_v0, %v60_v1 }
  0x6d   :  { %3004 = vmatpush3.bf16.msra.mxu1 %v3312_v3  ;;  %2983 = vmatprep.subr.bf16.mxu0 %v3313_v4  ;;  %v2634_v3 = vcombine.high %v48_v0, %v60_v1  ;;  %v49_v4 = vld [vmem:[%s4204_s0 + $0x48] sm:$0xff] }
  0x6e   :  { %3005 = vmatprep.subr.bf16.mxu1 %v3314_v5  ;;  %v61_v5 = vld [vmem:[%s4204_s0 + $0xa8] sm:$0xff] }
  0x70   :  { %2984 = vmatpush3.bf16.msra.mxu0 %v3315_v6  ;;  %v2635_v6 = vcombine.low %v49_v4, %v61_v5 }
  0x71   :  { %3006 = vmatpush3.bf16.msra.mxu1 %v3316_v7  ;;  %2985 = vmatprep.subr.bf16.mxu0 %v3317_v8  ;;  %v2636_v7 = vcombine.high %v49_v4, %v61_v5  ;;  %v3365_v8 = vld [vmem:[%s4205_s1 + $0x540] sm:$0xff]  }
  0x72   :  { %3007 = vmatprep.subr.bf16.mxu1 %v3318_v9  ;;  %v3366_v9 = vld [vmem:[%s4205_s1 + $0x5c0] sm:$0xff]  }
  0x74   :  { %2986 = vmatpush3.bf16.msra.mxu0 %v3319_v10  ;;  %v3367_v10 = vld [vmem:[%s4205_s1 + $0x500] sm:$0xff]  }
  0x75   :  { %3008 = vmatpush3.bf16.msra.mxu1 %v3320_v11  ;;  %2987 = vmatprep.subr.bf16.mxu0 %v3321_v12  ;;  %v3368_v11 = vld [vmem:[%s4205_s1 + $0x580] sm:$0xff]   ;;  %v3369_v12 = vld [vmem:[%s4205_s1 + $0x548] sm:$0xff]  }
  0x76   :  { %3009 = vmatprep.subr.bf16.mxu1 %v3322_v13  ;;  %v3370_v13 = vld [vmem:[%s4205_s1 + $0x5c8] sm:$0xff]  }
  0x78   :  { %2988 = vmatpush3.bf16.msra.mxu0 %v3323_v14  ;;  %v3371_v14 = vld [vmem:[%s4205_s1 + $0x508] sm:$0xff]  }
  0x79   :  { %3010 = vmatpush3.bf16.msra.mxu1 %v3324_v15  ;;  %2989 = vmatprep.subr.bf16.mxu0 %v3325_v16  ;;  %v3372_v15 = vld [vmem:[%s4205_s1 + $0x588] sm:$0xff]   ;;  %v3373_v16 = vld [vmem:[%s4205_s1 + $0x550] sm:$0xff]  }
  0x7a   :  { %3011 = vmatprep.subr.bf16.mxu1 %v3326_v17  ;;  %v3374_v17 = vld [vmem:[%s4205_s1 + $0x5d0] sm:$0xff]  }
  0x7c   :  { %2990 = vmatpush3.bf16.msra.mxu0 %v3327_v18  ;;  %v3375_v18 = vld [vmem:[%s4205_s1 + $0x510] sm:$0xff]  }
  0x7d   :  { %3012 = vmatpush3.bf16.msra.mxu1 %v3328_v19  ;;  %2991 = vmatprep.subr.bf16.mxu0 %v3329_v20  ;;  %v3376_v19 = vld [vmem:[%s4205_s1 + $0x590] sm:$0xff]   ;;  %v3377_v20 = vld [vmem:[%s4205_s1 + $0x558] sm:$0xff]  }
  0x7e   :  { %3013 = vmatprep.subr.bf16.mxu1 %v3330_v21  ;;  %v3378_v21 = vld [vmem:[%s4205_s1 + $0x5d8] sm:$0xff]  }
  0x80   :  { %2992 = vmatpush3.bf16.msra.mxu0 %v3331_v22  ;;  %v3379_v22 = vld [vmem:[%s4205_s1 + $0x518] sm:$0xff]  }
  0x81   :  { %3014 = vmatpush3.bf16.msra.mxu1 %v3332_v23  ;;  %3021 = vmatprep.subr.bf16.mxu0 %v3333_v32  ;;  %v3380_v23 = vld [vmem:[%s4205_s1 + $0x598] sm:$0xff]   ;;  %v3389_v32 = vld [vmem:[%s4205_s1 + $0x570] sm:$0xff]  }
  0x82   :  { %3043 = vmatprep.subr.bf16.mxu1 %v3334_v33  ;;  %v3390_v33 = vld [vmem:[%s4205_s1 + $0x5f0] sm:$0xff]  }
  0x83   :  { %2006 = vmatmul.mubr.bf16.vlgmr.msra.gmra.mrb[12].mxu0 %v2629_v27  ;;  %v3384_v27 = vld [vmem:[%s4205_s1 + $0x5a0] sm:$0xff]  }
  0x84   :  { %2047 = vmatmul.mubr.bf16.vlgmr.msra.gmra.mrb[12].mxu1 %v2631_v30  ;;  %3022 = vmatpush3.bf16.msra.mxu0 %v3335_v34  ;;  %v3387_v30 = vld [vmem:[%s4205_s1 + $0x528] sm:$0xff]   ;;  %v3391_v34 = vld [vmem:[%s4205_s1 + $0x530] sm:$0xff]  }
  0x85   :  { %3044 = vmatpush3.bf16.msra.mxu1 %v3336_v35  ;;  %3023 = vmatprep.subr.bf16.mxu0 %v3337_v36  ;;  %v3392_v35 = vld [vmem:[%s4205_s1 + $0x5b0] sm:$0xff]   ;;  %v3393_v36 = vld [vmem:[%s4205_s1 + $0x578] sm:$0xff]  }
  0x86   :  { %3045 = vmatprep.subr.bf16.mxu1 %v3338_v37  ;;  %2087 = vmatprep.mubr.bf16.mxu0 %v2634_v3  ;;  %v3394_v37 = vld [vmem:[%s4205_s1 + $0x5f8] sm:$0xff]  }
  0x87   :  { %2128 = vmatprep.mubr.bf16.mxu1 %v2636_v7 }
  0x88   :  { %3024 = vmatpush3.bf16.msra.mxu0 %v3339_v38  ;;  %v3395_v38 = vld [vmem:[%s4205_s1 + $0x538] sm:$0xff]  }
  0x89   :  { %3046 = vmatpush3.bf16.msra.mxu1 %v3340_v39  ;;  %3025 = vmatprep.subr.bf16.mxu0 %v3341_v40  ;;  %v3396_v39 = vld [vmem:[%s4205_s1 + $0x5b8] sm:$0xff]   ;;  %v50_v40 = vld [vmem:[%s4204_s0 + $0x50] sm:$0xff] }
  0x8a   :  { %3047 = vmatprep.subr.bf16.mxu1 %v3342_v41  ;;  %v62_v41 = vld [vmem:[%s4204_s0 + $0xb0] sm:$0xff] }
  0x8c   :  { %3026 = vmatpush3.bf16.msra.mxu0 %v3343_v42  ;;  %v51_v42 = vld [vmem:[%s4204_s0 + $0x58] sm:$0xff] }
  0x8d   :  { %3048 = vmatpush3.bf16.msra.mxu1 %v3344_v43  ;;  %3027 = vmatprep.subr.bf16.mxu0 %v3345_v44  ;;  %v63_v43 = vld [vmem:[%s4204_s0 + $0xb8] sm:$0xff]  ;;  %v2637_v44 = vcombine.low %v50_v40, %v62_v41 }
  0x8e   :  { %3049 = vmatprep.subr.bf16.mxu1 %v3346_v45  ;;  %v2638_v45 = vcombine.high %v50_v40, %v62_v41 }
  0x90   :  { %3028 = vmatpush3.bf16.msra.mxu0 %v3347_v46  ;;  %v2639_v46 = vcombine.low %v51_v42, %v63_v43 }
  0x91   :  { %3050 = vmatpush3.bf16.msra.mxu1 %v3348_v47  ;;  %3029 = vmatprep.subr.bf16.mxu0 %v3349_v48  ;;  %v2640_v47 = vcombine.high %v51_v42, %v63_v43 }
  0x92   :  { %3051 = vmatprep.subr.bf16.mxu1 %v3350_v49 }
  0x94   :  { %3030 = vmatpush3.bf16.msra.mxu0 %v3351_v50 }
  0x95   :  { %3052 = vmatpush3.bf16.msra.mxu1 %v3352_v51  ;;  %3031 = vmatprep.subr.bf16.mxu0 %v3353_v52 }
  0x96   :  { %3053 = vmatprep.subr.bf16.mxu1 %v3354_v53 }
  0x98   :  { %3032 = vmatpush3.bf16.msra.mxu0 %v3355_v54 }
  0x99   :  { %3054 = vmatpush3.bf16.msra.mxu1 %v3356_v55  ;;  %3033 = vmatprep.subr.bf16.mxu0 %v3357_v56 }
  0x9a   :  { %3055 = vmatprep.subr.bf16.mxu1 %v3358_v57 }
  0x9c   :  { %3034 = vmatpush3.bf16.msra.mxu0 %v3359_v58 }
  0x9d   :  { %3056 = vmatpush3.bf16.msra.mxu1 %v3360_v59  ;;  %3035 = vmatprep.subr.bf16.mxu0 %v3361_v60 }
  0x9e   :  { %3057 = vmatprep.subr.bf16.mxu1 %v3362_v61 }
  0xa0   :  { %3036 = vmatpush3.bf16.msra.mxu0 %v3363_v62 }
  0xa1   :  { %3058 = vmatpush3.bf16.msra.mxu1 %v3364_v63  ;;  %3065 = vmatprep.subr.bf16.mxu0 %v3365_v8 }
  0xa2   :  { %3087 = vmatprep.subr.bf16.mxu1 %v3366_v9 }
  0xa3   :  { %2088 = vmatmul.mubr.bf16.vlgmr.msra.gmra.mrb[16].mxu0 %v2633_v2 }
  0xa4   :  { %2129 = vmatmul.mubr.bf16.vlgmr.msra.gmra.mrb[16].mxu1 %v2635_v6  ;;  %3066 = vmatpush3.bf16.msra.mxu0 %v3367_v10 }
  0xa5   :  { %3088 = vmatpush3.bf16.msra.mxu1 %v3368_v11  ;;  %3067 = vmatprep.subr.bf16.mxu0 %v3369_v12 }
  0xa6   :  { %3089 = vmatprep.subr.bf16.mxu1 %v3370_v13 }
  0xa8   :  { %3068 = vmatpush3.bf16.msra.mxu0 %v3371_v14 }
  0xa9   :  { %3090 = vmatpush3.bf16.msra.mxu1 %v3372_v15  ;;  %3069 = vmatprep.subr.bf16.mxu0 %v3373_v16 }
  0xaa   :  { %3091 = vmatprep.subr.bf16.mxu1 %v3374_v17 }
  0xac   :  { %3070 = vmatpush3.bf16.msra.mxu0 %v3375_v18 }
  0xad   :  { %3092 = vmatpush3.bf16.msra.mxu1 %v3376_v19  ;;  %3071 = vmatprep.subr.bf16.mxu0 %v3377_v20 }
  0xae   :  { %3093 = vmatprep.subr.bf16.mxu1 %v3378_v21 }
  0xb0   :  { %3072 = vmatpush3.bf16.msra.mxu0 %v3379_v22 }
  0xb1   :  { %3094 = vmatpush3.bf16.msra.mxu1 %v3380_v23  ;;  %3073 = vmatprep.subr.bf16.mxu0 %v3381_v24 }
  0xb2   :  { %3095 = vmatprep.subr.bf16.mxu1 %v3382_v25 }
  0xb4   :  { %3074 = vmatpush3.bf16.msra.mxu0 %v3383_v26 }
  0xb5   :  { %3096 = vmatpush3.bf16.msra.mxu1 %v3384_v27  ;;  %3075 = vmatprep.subr.bf16.mxu0 %v3385_v28 }
  0xb6   :  { %3097 = vmatprep.subr.bf16.mxu1 %v3386_v29 }
  0xb8   :  { %3076 = vmatpush3.bf16.msra.mxu0 %v3387_v30 }
  0xb9   :  { %3098 = vmatpush3.bf16.msra.mxu1 %v3388_v31  ;;  %3077 = vmatprep.subr.bf16.mxu0 %v3389_v32 }
  0xba   :  { %3099 = vmatprep.subr.bf16.mxu1 %v3390_v33 }
  0xbc   :  { %3078 = vmatpush3.bf16.msra.mxu0 %v3391_v34 }
  0xbd   :  { %3100 = vmatpush3.bf16.msra.mxu1 %v3392_v35  ;;  %3079 = vmatprep.subr.bf16.mxu0 %v3393_v36 }
  0xbe   :  { %3101 = vmatprep.subr.bf16.mxu1 %v3394_v37 }
  0xc0   :  { %3080 = vmatpush3.bf16.msra.mxu0 %v3395_v38 }
  0xc1   :  { %3102 = vmatpush3.bf16.msra.mxu1 %v3396_v39 }
  0xc2   :  { %16 = vsyncpa [#allocation3], 0  ;;  %2169 = vmatprep.mubr.bf16.mxu0 %v2638_v45  ;;  %2210 = vmatprep.mubr.bf16.mxu1 %v2640_v47  ;;  %v2616_v50 = vld [vmem:[%s4206_s2] ss:$0 sm:$0xff]  ;;  %vm2229_vm0 = vcmask 64512   ;;  %vm2322_vm1 = vcmask 130048  }
  0xc3   :  { %2170 = vmatmul.mubr.bf16.vlgmr.msra.gmra.mrb[20].mxu0 %v2637_v44  ;;  %v2221_v17 = vld [vmem:[%s4207_s3] sm:$0xff]  ;;  %vm2417_vm2 = vcmask 261120   ;;  %vm2516_vm3 = vcmask 523264  }
  0xc4   :  { %2211 = vmatmul.mubr.bf16.vlgmr.msra.gmra.mrb[20].mxu1 %v2639_v46  ;;  %3132 = vmatprep.subr.mxu0 %v2221_v17 }
  0xc5   :  { %3133 = vmatpush3.msra.mxu0 %v2221_v17 }
  0xf6   :  { %v2861_v48 = vpop.f32.mrb[0].mxu0 }
  0xf7   :  { %v2883_v49 = vpop.f32.mrb[0].mxu1  ;;  %v2862_v51 = vpop.f32.mrb[1].mxu0 }
  0xf8   :  { %v2863_v52 = vadd.f32 %v2862_v51, %v2861_v48  ;;  %v2884_v53 = vpop.f32.mrb[1].mxu1  ;;  %v2864_v54 = vpop.f32.mrb[2].mxu0 }
  0xf9   :  { %v2885_v55 = vadd.f32 %v2884_v53, %v2883_v49  ;;  %v2886_v56 = vpop.f32.mrb[2].mxu1  ;;  %v2865_v57 = vpop.f32.mrb[3].mxu0 }
  0xfa   :  { %v1762_v58 = vadd.f32 %v2863_v52, %v2616_v50  ;;  %v2866_v59 = vadd.f32 %v2865_v57, %v2864_v54  ;;  %v2887_v60 = vpop.f32.mrb[3].mxu1 }
  0xfb   :  { %v2888_v61 = vadd.f32 %v2887_v60, %v2886_v56 }
  0xfc   :  { %v1803_v62 = vadd.f32 %v2885_v55, %v1762_v58  ;;  %v1765_v63 = vadd.f32 %v2866_v59, %v2616_v50 }
  0xfe   :  { %v1806_v0 = vadd.f32 %v2888_v61, %v1765_v63 }
 0x116   :  { %v2905_v1 = vpop.f32.mrb[4].mxu0 }
 0x117   :  { %v2927_v2 = vpop.f32.mrb[4].mxu1  ;;  %v2906_v3 = vpop.f32.mrb[5].mxu0 }
 0x118   :  { %v2907_v4 = vadd.f32 %v2906_v3, %v2905_v1  ;;  %v2928_v5 = vpop.f32.mrb[5].mxu1  ;;  %v2908_v6 = vpop.f32.mrb[6].mxu0 }
 0x119   :  { %v2929_v7 = vadd.f32 %v2928_v5, %v2927_v2  ;;  %v2930_v8 = vpop.f32.mrb[6].mxu1  ;;  %v2909_v9 = vpop.f32.mrb[7].mxu0 }
 0x11a   :  { %v1844_v10 = vadd.f32 %v2907_v4, %v1803_v62  ;;  %v2910_v11 = vadd.f32 %v2909_v9, %v2908_v6  ;;  %v2931_v12 = vpop.f32.mrb[7].mxu1 }
 0x11b   :  { %v2932_v13 = vadd.f32 %v2931_v12, %v2930_v8 }
 0x11c   :  { %v1885_v14 = vadd.f32 %v2929_v7, %v1844_v10  ;;  %v1847_v15 = vadd.f32 %v2910_v11, %v1806_v0 }
 0x11e   :  { %v1888_v16 = vadd.f32 %v2932_v13, %v1847_v15 }
 0x136   :  { %v2949_v18 = vpop.f32.mrb[8].mxu0 }
 0x137   :  { %v2971_v19 = vpop.f32.mrb[8].mxu1  ;;  %v2950_v20 = vpop.f32.mrb[9].mxu0 }
 0x138   :  { %v2972_v21 = vpop.f32.mrb[9].mxu1  ;;  %v2951_v22 = vadd.f32 %v2950_v20, %v2949_v18  ;;  %v2952_v24 = vpop.f32.mrb[10].mxu0  ;;  %v2313_v20 = vld [vmem:[%s4209_s5] sm:$0xff] }
 0x139   :  { %v2973_v23 = vadd.f32 %v2972_v21, %v2971_v19  ;;  %v2974_v25 = vpop.f32.mrb[10].mxu1  ;;  %v2953_v26 = vpop.f32.mrb[11].mxu0  ;;  %v2314_v21 = vld [vmem:[%s4209_s5 + $0x8] sm:$0xff] }
 0x13a   :  { %v2975_v27 = vpop.f32.mrb[11].mxu1  ;;  %v1926_v28 = vadd.f32 %v2951_v22, %v1885_v14  ;;  %v2954_v29 = vadd.f32 %v2953_v26, %v2952_v24  ;;  %v3174_v22 = vpack.c.bf16 %v2314_v21, %v2313_v20  ;;  %v2407_v24 = vld [vmem:[%s4211_s7 + $0x8] sm:$0xff]  ;;  %v2833_v26 = vld [vmem:[%s4208_s4] ss:$0 sm:$0xff] }
 0x13b   :  { %v2976_v30 = vadd.f32 %v2975_v27, %v2974_v25 }
 0x13c   :  { %v1967_v31 = vadd.f32 %v2973_v23, %v1926_v28  ;;  %v1929_v32 = vadd.f32 %v2954_v29, %v1888_v16  ;;  %3175 = vmatprep.subr.bf16.mxu0 %v3174_v22  ;;  %v2406_v23 = vld [vmem:[%s4211_s7] sm:$0xff] }
 0x13d   :  { %v3178_v25 = vpack.c.bf16 %v2407_v24, %v2406_v23 }
 0x13e   :  { %v1970_v33 = vadd.f32 %v2976_v30, %v1929_v32 }
 0x156   :  { %v2993_v34 = vpop.f32.mrb[12].mxu0 }
 0x157   :  { %v3015_v35 = vpop.f32.mrb[12].mxu1  ;;  %v2994_v36 = vpop.f32.mrb[13].mxu0 }
 0x158   :  { %v2995_v37 = vadd.f32 %v2994_v36, %v2993_v34  ;;  %v3016_v38 = vpop.f32.mrb[13].mxu1  ;;  %v2996_v39 = vpop.f32.mrb[14].mxu0  ;;  %v2409_v34 = vld [vmem:[%s4211_s7 + $0x18] sm:$0xff]  ;;  %v2501_v36 = vld [vmem:[%s4213_s9] sm:$0xff] }
 0x159   :  { %v3017_v40 = vadd.f32 %v3016_v38, %v3015_v35  ;;  %v3018_v41 = vpop.f32.mrb[14].mxu1  ;;  %v2997_v42 = vpop.f32.mrb[15].mxu0  ;;  %v2503_v38 = vld [vmem:[%s4213_s9 + $0x10] sm:$0xff] }
 0x15a   :  { %v2008_v43 = vadd.f32 %v2995_v37, %v1967_v31  ;;  %v2998_v44 = vadd.f32 %v2997_v42, %v2996_v39  ;;  %v3019_v45 = vpop.f32.mrb[15].mxu1  ;;  %v2502_v37 = vld [vmem:[%s4213_s9 + $0x8] sm:$0xff]  ;;  %v2505_v42 = vld [vmem:[%s4213_s9 + $0x20] sm:$0xff] }
 0x15b   :  { %v3020_v46 = vadd.f32 %v3019_v45, %v3018_v41  ;;  %v3186_v39 = vpack.c.bf16 %v2502_v37, %v2501_v36  ;;  %v2836_v45 = vld [vmem:[%s4210_s6] ss:$0 sm:$0xff] }
 0x15c   :  { %v2049_v47 = vadd.f32 %v3017_v40, %v2008_v43  ;;  %v2011_v48 = vadd.f32 %v2998_v44, %v1970_v33  ;;  %v2408_v33 = vld [vmem:[%s4211_s7 + $0x10] sm:$0xff]  ;;  %v2504_v40 = vld [vmem:[%s4213_s9 + $0x18] sm:$0xff]  ;;  %v2506_v43 = vld [vmem:[%s4213_s9 + $0x28] sm:$0xff] }
 0x15d   :  { %v3182_v35 = vpack.c.bf16 %v2409_v34, %v2408_v33  ;;  %v3190_v41 = vpack.c.bf16 %v2504_v40, %v2503_v38  ;;  %3187 = vmatprep.subr.bf16.mxu1 %v3186_v39  ;;  %v3194_v44 = vpack.c.bf16 %v2506_v43, %v2505_v42 }
 0x15e   :  { %v2052_v49 = vadd.f32 %v3020_v46, %v2011_v48  ;;  %3189 = vmatpush3.bf16.msra.mxu1 %v3186_v39 }
 0x15f   :  { %3191 = vmatprep.subr.bf16.mxu1 %v3190_v41 }
 0x162   :  { %3193 = vmatpush3.bf16.msra.mxu1 %v3190_v41 }
 0x163   :  { %3195 = vmatprep.subr.bf16.mxu1 %v3194_v44 }
 0x166   :  { %3197 = vmatpush3.bf16.msra.mxu1 %v3194_v44 }
 0x176   :  { %v3037_v50 = vpop.f32.mrb[16].mxu0 }
 0x177   :  { %v3059_v51 = vpop.f32.mrb[16].mxu1  ;;  %v3038_v52 = vpop.f32.mrb[17].mxu0 }
 0x178   :  { %v3039_v53 = vadd.f32 %v3038_v52, %v3037_v50  ;;  %v3060_v54 = vpop.f32.mrb[17].mxu1  ;;  %v3040_v55 = vpop.f32.mrb[18].mxu0  ;;  %v2507_v52 = vld [vmem:[%s4213_s9 + $0x30] sm:$0xff] }
 0x179   :  { %v3061_v56 = vadd.f32 %v3060_v54, %v3059_v51  ;;  %v3062_v57 = vpop.f32.mrb[18].mxu1  ;;  %v3041_v58 = vpop.f32.mrb[19].mxu0 }
 0x17a   :  { %v2090_v59 = vadd.f32 %v3039_v53, %v2049_v47  ;;  %v3042_v60 = vadd.f32 %v3041_v58, %v3040_v55  ;;  %v3063_v61 = vpop.f32.mrb[19].mxu1  ;;  %v2508_v53 = vld [vmem:[%s4213_s9 + $0x38] sm:$0xff]  ;;  %v2839_v55 = vld [vmem:[%s4212_s8] ss:$0 sm:$0xff]  ;;  %s3421_s9 = smov [#allocation2]  }
 0x17b   :  { %v3064_v62 = vadd.f32 %v3063_v61, %v3062_v57  ;;  %v3198_v54 = vpack.c.bf16 %v2508_v53, %v2507_v52  ;;  %s2605_s21 = sshll.u32 %s3421_s9, 4  ;;  %s2606_s21 = int_to_ptr.vmem [resolvable:$true] %s2605_s21 }
 0x17c   :  { %v2131_v63 = vadd.f32 %v3061_v56, %v2090_v59  ;;  %v2093_v0 = vadd.f32 %v3042_v60, %v2052_v49  ;;  %s3397_s8 = scalar_lea.vmem %s2606_s21, 256  ;;  %p3402_p1 = scmp.lt.s32.totalorder %s2606_s21, %s2606_s21 }
 0x17d   :  { %3199 = vmatprep.subr.bf16.mxu1 %v3198_v54  ;;  %p3398_p0 = scmp.ne.s32.totalorder %s2606_s21, %s3397_s8  ;;  %p3403_p2 = scmp.lt.s32.totalorder %s3397_s8, %s3397_s8 }
 0x17e   :  { %v2134_v1 = vadd.f32 %v3064_v62, %v2093_v0  ;;  %3201 = vmatpush3.bf16.msra.mxu1 %v3198_v54  ;;  %v2842_v62 = vld [vmem:[%s4214_s10] ss:$0 sm:$0xff] }
 0x17f   :  { %p3404_p3 = por %p3403_p2, %p3402_p1 }
 0x181   :  { %p3405_p4 = pnand %p3404_p3, %p3398_p0 }
 0x196   :  { %v3081_v2 = vpop.f32.mrb[20].mxu0 }
 0x197   :  { %v3103_v3 = vpop.f32.mrb[20].mxu1  ;;  %v3082_v4 = vpop.f32.mrb[21].mxu0 }
 0x198   :  { %v3104_v5 = vpop.f32.mrb[21].mxu1  ;;  %v3083_v6 = vadd.f32 %v3082_v4, %v3081_v2  ;;  %v3084_v8 = vpop.f32.mrb[22].mxu0 }
 0x199   :  { %v3105_v7 = vadd.f32 %v3104_v5, %v3103_v3  ;;  %v3106_v9 = vpop.f32.mrb[22].mxu1  ;;  %v3085_v10 = vpop.f32.mrb[23].mxu0 }
 0x19a   :  { %v3107_v11 = vpop.f32.mrb[23].mxu1  ;;  %v2172_v12 = vadd.f32 %v3083_v6, %v2131_v63  ;;  %v3086_v13 = vadd.f32 %v3085_v10, %v3084_v8 }
 0x19b   :  { %v3108_v14 = vadd.f32 %v3107_v11, %v3106_v9 }
 0x19c   :  { %v2213_v15 = vadd.f32 %v3105_v7, %v2172_v12  ;;  %v2175_v16 = vadd.f32 %v3086_v13, %v2134_v1 }
 0x19e   :  { %v2219_v17 = vmax.f32 %v2213_v15, 0.0  ;;  %v2216_v18 = vadd.f32 %v3108_v14, %v2175_v16 }
 0x1a0   :  { %v2220_v19 = vmax.f32 %v2216_v18, 0.0  ;;  %3134 = vmatprep.mubr.msk.f32.mxu0 %vm2229_vm0, %v2219_v17 }
 0x1a2   :  { %3135 = vmatmul.mubr.msk.f32.vlgmr.msra.gmra.mrb[24].mxu0 %vm2229_vm0, %v2220_v19 }
 0x1a3   :  { %3177 = vmatpush3.bf16.msra.mxu0 %v3174_v22 }
 0x1a4   :  { %3179 = vmatprep.subr.bf16.mxu0 %v3178_v25 }
 0x275   :  { %v3136_v27 = vpop.f32.mrb[24].mxu0 }
 0x276   :  { %v2308_v28 = vadd.f32 %v3136_v27, %v2833_v26  ;;  %v2302_v29 = vpop.f32.mrb[25].mxu0 }
 0x277   :  { %v2303_v30 = vadd.f32 %v2833_v26, %v2302_v29 }
 0x278   :  { %v2312_v32 = vmax.f32 %v2308_v28, 0.0 }
 0x279   :  { %v2311_v31 = vmax.f32 %v2303_v30, 0.0 }
 0x27b   :  { %3141 = vmatprep.mubr.msk.f32.mxu0 %vm2322_vm1, %v2311_v31 }
 0x27c   :  { %3142 = vmatmul.mubr.msk.f32.vlgmr.msra.gmra.mrb[26].mxu0 %vm2322_vm1, %v2312_v32 }
 0x27d   :  { %3181 = vmatpush3.bf16.msra.mxu0 %v3178_v25 }
 0x27e   :  { %3183 = vmatprep.subr.bf16.mxu0 %v3182_v35 }
 0x281   :  { %3185 = vmatpush3.bf16.msra.mxu0 %v3182_v35 }
 0x34f   :  { %v3143_v46 = vpop.f32.mrb[26].mxu0 }
 0x350   :  { %v2401_v47 = vadd.f32 %v3143_v46, %v2836_v45  ;;  %v2395_v48 = vpop.f32.mrb[27].mxu0 }
 0x351   :  { %v2396_v49 = vadd.f32 %v2836_v45, %v2395_v48 }
 0x352   :  { %v2405_v51 = vmax.f32 %v2401_v47, 0.0 }
 0x353   :  { %v2404_v50 = vmax.f32 %v2396_v49, 0.0 }
 0x355   :  { %3152 = vmatprep.mubr.msk.f32.mxu0 %vm2417_vm2, %v2404_v50 }
 0x356   :  { %3153 = vmatmul.mubr.msk.f32.vlgmr.msra.gmra.mrb[28].mxu0 %vm2417_vm2, %v2405_v51 }
 0x429   :  { %v3154_v56 = vpop.f32.mrb[28].mxu0 }
 0x42a   :  { %v2496_v57 = vadd.f32 %v3154_v56, %v2839_v55  ;;  %v2490_v58 = vpop.f32.mrb[29].mxu0 }
 0x42b   :  { %v2491_v59 = vadd.f32 %v2839_v55, %v2490_v58 }
 0x42c   :  { %v2500_v61 = vmax.f32 %v2496_v57, 0.0 }
 0x42d   :  { %v2499_v60 = vmax.f32 %v2491_v59, 0.0 }
 0x42f   :  { %3171 = vmatprep.mubr.msk.f32.mxu1 %vm2516_vm3, %v2499_v60 }
 0x430   :  { %3172 = vmatmul.mubr.msk.f32.vlgmr.msra.gmra.mrb[24].mxu1 %vm2516_vm3, %v2500_v61 }
 0x503   :  { %v3173_v63 = vpop.f32.mrb[24].mxu1 }
 0x504   :  { %v2595_v0 = vadd.f32 %v3173_v63, %v2842_v62  ;;  %v2589_v1 = vpop.f32.mrb[25].mxu1 }
 0x505   :  { %v2590_v2 = vadd.f32 %v2842_v62, %v2589_v1 }
 0x506   :  { %2599 = vst [vmem:[#allocation2 + $0x8] sm:$0xff] %v2595_v0 }
 0x507   :  { %2598 = vst [vmem:[#allocation2] sm:$0xff] %v2590_v2 }
 0x508   :  { %3408 = shalt.err (!%p3405_p4)
}
 0x509   :  { %s3409_s10 = scalar_lea.hbm %s4215_s11, 256 }
 0x50a   :  { %p3410_p5 = scmp.ne.s32.totalorder %s4215_s11, %s3409_s10  ;;  %p3413_p6 = scmp.lt.u32.totalorder %s3409_s10, %s4215_s11 }
 0x50c   :  { %p3415_p7 = pnand %p3413_p6, %p3410_p5 }
 0x50e   :  { %3418 = shalt.err (!%p3415_p7)
}
 0x50f   :  { %s3422_s26 = smov 128   ;;  %s3423_s27 = smov 8  }
 0x510   :  { %2611 = dma.vmem_to_hbm [thread:$0]  %s2606_s21, 256, %s4215_s11, [#allocation3], %s3422_s26, %s3422_s26, %s3423_s27  }
 0x511   :  { %3419 = dma.done.wait [#allocation3], 256  }
 0x512   :  { %3420 = vsyncadd [#allocation3], 4294967040 }
 0x513   :  { %2615 = vsyncpa [#allocation3], 1 }

</bundles_post_ra>
